<compile_context>
chip_gen: v6e
topology: v6e:2x2x1
jax: 0.10.0
libtpu: 0.0.40
codegen_flags: <defaults>
</compile_context>

<pallas_src>
import functools
import numpy as np

import jax
import jax.numpy as jnp
from jax.experimental import pallas as pl
from jax.experimental.pallas import tpu as pltpu


# ----------------------------------------------------------------------------
# weights / schedule helpers (host-side glue, identical to the PyTorch init)
# ----------------------------------------------------------------------------
def _make_weights(weights, n_heads):
    if weights == 'constant':
        w = np.ones(n_heads, dtype=np.float64)
    elif weights == 'exp':
        w = np.exp(-0.5 * np.arange(n_heads))
    elif weights == 'fraction':
        w = 1.0 / (np.arange(n_heads) + 0.25)
    elif weights == 'linear':
        w = 1.0 - np.arange(n_heads) / (n_heads + 1)
    elif weights == 'last':
        w = np.array([1, 0, 0, 0, 0, 0], dtype=np.float64)
    else:
        w = np.array([0.25, 0.25, 0.25, 0.25, 0, 0], dtype=np.float64)
    w = (w / np.sum(w))[::-1]
    return np.ascontiguousarray(w).astype(np.float32)


def _make_teacher_temp_schedule(warmup_teacher_temp, teacher_temp,
                                warmup_teacher_temp_epochs, nepochs):
    return np.concatenate((
        np.linspace(warmup_teacher_temp, teacher_temp, warmup_teacher_temp_epochs),
        np.ones(nepochs - warmup_teacher_temp_epochs) * teacher_temp,
    )).astype(np.float32)


# ----------------------------------------------------------------------------
# Main loss kernel: one grid step = one (head, crop) student block of (B, D).
#   kernel args (PrefetchScalarGridSpec):
#     temp_ref (SMEM scalar), student_ref (B,D), teacher_ref (2B,D),
#     center_ref (1,D), loss_ref (8,128), t_probs_ref (2B,D) scratch,
#     acc_ref (1,1) scratch.
# ----------------------------------------------------------------------------
def _desd_loss_kernel(temp_ref, student_ref, teacher_ref, center_ref,
                      loss_ref, t_probs_ref, acc_ref, *,
                      b, ncrops, inv_student_temp, loss_scale):
    v = pl.program_id(1)                 # crop index (accumulation axis)

    # -- per-head init (crop 0): zero accumulator, build teacher softmax ------
    @pl.when(v == 0)
    def _init():
        acc_ref[...] = jnp.zeros_like(acc_ref)
        temp = temp_ref[0]
        t = (teacher_ref[...].astype(jnp.float32)
             - center_ref[...].astype(jnp.float32)) / temp
        t = t - jnp.max(t, axis=-1, keepdims=True)
        te = jnp.exp(t)
        t_probs_ref[...] = te / jnp.sum(te, axis=-1, keepdims=True)

    # -- student scaled logits + log-sum-exp, computed once per (head, crop) --
    s = student_ref[...].astype(jnp.float32) * inv_student_temp      # (B, D)
    m = jnp.max(s, axis=-1, keepdims=True)                            # (B, 1)
    lse = m + jnp.log(jnp.sum(jnp.exp(s - m), axis=-1, keepdims=True))  # (B, 1)
    sum_lse = jnp.sum(lse, axis=0, keepdims=True)                     # (1, 1)

    # CE(tq, s) summed over batch = sum_rows(lse) - sum(tq * s)  (sum_d tq = 1)
    @pl.when(v != 0)   # teacher chunk iq = 0 pairs with every crop v != 0
    def _chunk0():
        cross = jnp.sum(jnp.sum(t_probs_ref[:b, :] * s, axis=-1, keepdims=True),
                        axis=0, keepdims=True)
        acc_ref[...] += sum_lse - cross

    @pl.when(v != 1)   # teacher chunk iq = 1 pairs with every crop v != 1
    def _chunk1():
        cross = jnp.sum(jnp.sum(t_probs_ref[b:, :] * s, axis=-1, keepdims=True),
                        axis=0, keepdims=True)
        acc_ref[...] += sum_lse - cross

    # -- finalize: single broadcast + combined 1/(B * n_loss_terms) scale -----
    @pl.when(v == ncrops - 1)
    def _finalize():
        loss_ref[...] = jnp.broadcast_to(acc_ref[...] * loss_scale,
                                         loss_ref.shape)


# ----------------------------------------------------------------------------
# EMA center update (update_center) — tiny un-gridded kernel.
# ----------------------------------------------------------------------------
def _center_update_kernel(teacher_ref, center_ref, newc_ref, *, momentum):
    t = teacher_ref[...].astype(jnp.float32)
    batch_center = jnp.sum(t, axis=0, keepdims=True) * (1.0 / t.shape[0])
    newc_ref[...] = (center_ref[...] * momentum
                     + batch_center * (1.0 - momentum))
    # TODO(synk): under data parallelism the original DINO/DeSD update_center
    # all-reduces batch_center across replicas; single-device only here.


# ----------------------------------------------------------------------------
# Module wrapper
# ----------------------------------------------------------------------------
class DeSDLossPallas:
    def __init__(self, out_dim, ncrops, n_heads, warmup_teacher_temp, teacher_temp,
                 warmup_teacher_temp_epochs, nepochs, student_temp=0.1,
                 center_momentum=0.9, weights=None):
        self.out_dim = out_dim
        self.ncrops = ncrops
        self.n_heads = n_heads
        self.student_temp = student_temp
        self.center_momentum = center_momentum
        # buffers (deterministic init, as in the PyTorch module)
        self.center = jnp.zeros((1, out_dim), jnp.float32)
        self.loss_center = jnp.zeros((1, 4), jnp.float32)   # unused in forward
        self.weights = _make_weights(weights, n_heads)
        self.teacher_temp_schedule = _make_teacher_temp_schedule(
            warmup_teacher_temp, teacher_temp, warmup_teacher_temp_epochs, nepochs)

    def __call__(self, student_output, teacher_output, epoch):
        # student_output: list of n_heads arrays, each (ncrops*B, out_dim)
        # teacher_output: list of arrays; only [-1] is used, shape (2*B, out_dim)
        D = self.out_dim
        H, C = self.n_heads, self.ncrops
        teacher = teacher_output[-1]                         # keep input dtype
        b = teacher.shape[0] // 2
        # stack heads along a leading axis, NO dtype cast (up-cast is in-kernel)
        student = jnp.stack(student_output, axis=0)          # (H, C*B, D)

        temp = jnp.asarray(self.teacher_temp_schedule)[epoch].reshape(1).astype(jnp.float32)

        n_loss_terms = 2 * C - 2
        kernel = functools.partial(
            _desd_loss_kernel,
            b=b, ncrops=C,
            inv_student_temp=1.0 / self.student_temp,
            loss_scale=1.0 / (b * n_loss_terms))

        grid_spec = pltpu.PrefetchScalarGridSpec(
            num_scalar_prefetch=1,               # teacher temp -> SMEM
            grid=(H, C),
            in_specs=[
                # student: one (B, D) crop block per grid step (pipelined DMA)
                pl.BlockSpec((None, b, D), lambda i, v, t: (i, v, 0)),
                # teacher / center: constant block index -> VMEM resident
                pl.BlockSpec((2 * b, D), lambda i, v, t: (0, 0)),
                pl.BlockSpec((1, D), lambda i, v, t: (0, 0)),
            ],
            out_specs=pl.BlockSpec((None, 8, 128), lambda i, v, t: (i, 0, 0)),
            scratch_shapes=[
                pltpu.VMEM((2 * b, D), jnp.float32),   # teacher softmax probs
                pltpu.VMEM((1, 1), jnp.float32),       # per-head loss accumulator
            ],
        )

        loss_mat = pl.pallas_call(
            kernel,
            out_shape=jax.ShapeDtypeStruct((H, 8, 128), jnp.float32),
            grid_spec=grid_spec,
            compiler_params=pltpu.CompilerParams(
                dimension_semantics=("parallel", "arbitrary")),
        )(temp, student, teacher, self.center)

        # TODO(synk): for DINO-scale out_dim (>=16K) add an out_dim grid axis
        # with streaming lse so per-block VMEM stays (B, tile_D).

        per_head = loss_mat[:, 0, 0]                         # (n_heads,)
        total_loss = jnp.sum(per_head * jnp.asarray(self.weights))

        # EMA center update (register_buffer side-effect, carried functionally)
        new_center = pl.pallas_call(
            functools.partial(_center_update_kernel, momentum=self.center_momentum),
            out_shape=jax.ShapeDtypeStruct((1, D), jnp.float32),
            in_specs=[
                pl.BlockSpec(memory_space=pltpu.MemorySpace.VMEM),
                pl.BlockSpec(memory_space=pltpu.MemorySpace.VMEM),
            ],
            out_specs=pl.BlockSpec(memory_space=pltpu.MemorySpace.VMEM),
        )(teacher, self.center)
        self.center = new_center   # NOTE: thread functionally if jit-ing the wrapper

        return tuple([total_loss, per_head[-1]]
                     + [per_head[i] for i in range(self.n_heads - 1)])


# ----------------------------------------------------------------------------
# Pure-JAX reference (mirrors the PyTorch forward) used for a sanity check.
# ----------------------------------------------------------------------------
def _reference(student_output, teacher_output, epoch, *, ncrops, n_heads,
               student_temp, weights, schedule, center):
    temp = schedule[epoch]
    t_full = jax.nn.softmax((teacher_output[-1] - center) / temp, axis=-1)
    B = teacher_output[-1].shape[0] // 2
    t_chunks = [t_full[:B], t_full[B:]]
    s_chunks = [[(s / student_temp)[v * B:(v + 1) * B] for v in range(ncrops)]
                for s in student_output]
    loss = [0.0] * n_heads
    n_terms = 0
    for iq in range(2):
        for v in range(ncrops):
            if v == iq:
                continue
            for i in range(n_heads):
                log_sm = jax.nn.log_softmax(s_chunks[i][v], axis=-1)
                loss[i] = loss[i] + jnp.mean(jnp.sum(-t_chunks[iq] * log_sm, axis=-1))
            n_terms += 1
    loss = [l / n_terms for l in loss]
    total = sum(l * w for l, w in zip(loss, weights))
    return tuple([total, loss[-1]] + loss[:-1])


if __name__ == "__main__":
    out_dim, ncrops, n_heads, B = 128, 4, 4, 8
    epoch = 3

    loss_mod = DeSDLossPallas(
        out_dim=out_dim, ncrops=ncrops, n_heads=n_heads,
        warmup_teacher_temp=0.04, teacher_temp=0.07,
        warmup_teacher_temp_epochs=5, nepochs=10,
        student_temp=0.1, center_momentum=0.9, weights='constant')

    key = jax.random.PRNGKey(0)
    keys = jax.random.split(key, n_heads + 1)
    student_output = [jax.random.normal(keys[i], (ncrops * B, out_dim), jnp.float32)
                      for i in range(n_heads)]
    teacher_output = [jax.random.normal(keys[-1], (2 * B, out_dim), jnp.float32)]

    outs = loss_mod(student_output, teacher_output, epoch)
    outs = [jax.block_until_ready(o) for o in outs]
    new_center = jax.block_until_ready(loss_mod.center)

    # sanity check against a pure-JAX reference of the same math
    ref = _reference(student_output, teacher_output, epoch,
                     ncrops=ncrops, n_heads=n_heads, student_temp=0.1,
                     weights=loss_mod.weights,
                     schedule=loss_mod.teacher_temp_schedule,
                     center=jnp.zeros((1, out_dim), jnp.float32))
    for got, want in zip(outs, ref):
        np.testing.assert_allclose(np.asarray(got), np.asarray(want),
                                   rtol=1e-4, atol=1e-4)

    expected_center = (jnp.zeros((1, out_dim), jnp.float32) * 0.9
                       + jnp.mean(teacher_output[-1], axis=0, keepdims=True) * 0.1)
    np.testing.assert_allclose(np.asarray(new_center), np.asarray(expected_center),
                               rtol=1e-5, atol=1e-5)

    print("KERNEL_OK")
</pallas_src>

<mosaic_0001>
module attributes {stable_mosaic.version = 11 : i64} {
  func.func @_desd_loss_kernel(%arg0: i32, %arg1: i32, %arg2: memref<1xf32, #tpu.memory_space<smem>>, %arg3: memref<1x8x128xf32, #tpu.memory_space<vmem>>, %arg4: memref<16x128xf32, #tpu.memory_space<vmem>>, %arg5: memref<1x128xf32, #tpu.memory_space<vmem>>, %arg6: memref<1x8x128xf32, #tpu.memory_space<vmem>>, %arg7: memref<16x128xf32, #tpu.memory_space<vmem>>, %arg8: memref<1x1xf32, #tpu.memory_space<vmem>>) attributes {dimension_semantics = [#tpu.dimension_semantics<parallel>, #tpu.dimension_semantics<arbitrary>], iteration_bounds = array<i64: 4, 4>, scalar_prefetch = 1 : i64, scratch_operands = 2 : i64, tpu.core_type = #tpu.core_type<tc>, window_params = [{transform_indices = @transform_0, window_bounds = array<i64: 1, 8, 128>}, {pipeline_mode = #tpu.pipeline_mode<synchronous>, transform_indices = @transform_1, window_bounds = array<i64: 16, 128>}, {pipeline_mode = #tpu.pipeline_mode<synchronous>, transform_indices = @transform_2, window_bounds = array<i64: 1, 128>}, {transform_indices = @transform_3, window_bounds = array<i64: 1, 8, 128>}]} {
    %c0_i32 = arith.constant 0 : i32
    %0 = arith.cmpi eq, %arg1, %c0_i32 : i32
    %1 = arith.extui %0 : i1 to i32
    %c0_i32_0 = arith.constant 0 : i32
    %2 = arith.cmpi ne, %1, %c0_i32_0 : i32
    scf.if %2 {
      %cst_10 = arith.constant 0.000000e+00 : f32
      %27 = vector.broadcast %cst_10 : f32 to vector<1x1xf32>
      %c0_11 = arith.constant 0 : index
      %c0_12 = arith.constant 0 : index
      %28 = vector.load %arg8[%c0_11, %c0_12] : memref<1x1xf32, #tpu.memory_space<vmem>>, vector<1x1xf32>
      tpu.vector_store %arg8[%c0_11, %c0_12], %27 {strides = array<i32>} : memref<1x1xf32, #tpu.memory_space<vmem>>, vector<1x1xf32>,
      %c0_13 = arith.constant 0 : index
      %29 = memref.load %arg2[%c0_13] : memref<1xf32, #tpu.memory_space<smem>>
      %c0_14 = arith.constant 0 : index
      %c0_15 = arith.constant 0 : index
      %30 = vector.load %arg4[%c0_14, %c0_15] : memref<16x128xf32, #tpu.memory_space<vmem>>, vector<16x128xf32>
      %c0_16 = arith.constant 0 : index
      %c0_17 = arith.constant 0 : index
      %31 = vector.load %arg5[%c0_16, %c0_17] : memref<1x128xf32, #tpu.memory_space<vmem>>, vector<1x128xf32>
      %32 = vector.broadcast %31 : vector<1x128xf32> to vector<16x128xf32>
      %33 = arith.subf %30, %32 : vector<16x128xf32>
      %34 = vector.broadcast %29 : f32 to vector<16x128xf32>
      %35 = arith.divf %33, %34 : vector<16x128xf32>
      %cst_18 = arith.constant dense<0xFF800000> : vector<16xf32>
      %36 = vector.multi_reduction <maximumf>, %35, %cst_18 [1] : vector<16x128xf32> to vector<16xf32>
      %37 = vector.shape_cast %36 : vector<16xf32> to vector<16x1xf32>
      %38 = vector.broadcast %37 : vector<16x1xf32> to vector<16x128xf32>
      %39 = arith.subf %35, %38 : vector<16x128xf32>
      %40 = math.exp %39 : vector<16x128xf32>
      %cst_19 = arith.constant dense<0.000000e+00> : vector<16xf32>
      %41 = vector.multi_reduction <add>, %40, %cst_19 [1] : vector<16x128xf32> to vector<16xf32>
      %42 = vector.shape_cast %41 : vector<16xf32> to vector<16x1xf32>
      %43 = vector.broadcast %42 : vector<16x1xf32> to vector<16x128xf32>
      %44 = arith.divf %40, %43 : vector<16x128xf32>
      %c0_20 = arith.constant 0 : index
      %c0_21 = arith.constant 0 : index
      %45 = vector.load %arg7[%c0_20, %c0_21] : memref<16x128xf32, #tpu.memory_space<vmem>>, vector<16x128xf32>
      tpu.vector_store %arg7[%c0_20, %c0_21], %44 {strides = array<i32>} : memref<16x128xf32, #tpu.memory_space<vmem>>, vector<16x128xf32>,
    } else {
    }
    %c0 = arith.constant 0 : index
    %c0_1 = arith.constant 0 : index
    %c0_2 = arith.constant 0 : index
    %3 = vector.load %arg3[%c0, %c0_1, %c0_2] : memref<1x8x128xf32, #tpu.memory_space<vmem>>, vector<1x8x128xf32>
    %4 = vector.shape_cast %3 : vector<1x8x128xf32> to vector<8x128xf32>
    %cst = arith.constant 1.000000e+01 : f32
    %5 = vector.broadcast %cst : f32 to vector<8x128xf32>
    %6 = arith.mulf %4, %5 : vector<8x128xf32>
    %cst_3 = arith.constant dense<0xFF800000> : vector<8xf32>
    %7 = vector.multi_reduction <maximumf>, %6, %cst_3 [1] : vector<8x128xf32> to vector<8xf32>
    %8 = vector.shape_cast %7 : vector<8xf32> to vector<8x1xf32>
    %9 = vector.broadcast %8 : vector<8x1xf32> to vector<8x128xf32>
    %10 = arith.subf %6, %9 : vector<8x128xf32>
    %11 = math.exp %10 : vector<8x128xf32>
    %cst_4 = arith.constant dense<0.000000e+00> : vector<8xf32>
    %12 = vector.multi_reduction <add>, %11, %cst_4 [1] : vector<8x128xf32> to vector<8xf32>
    %13 = vector.shape_cast %12 : vector<8xf32> to vector<8x1xf32>
    %14 = math.log %13 : vector<8x1xf32>
    %15 = arith.addf %8, %14 : vector<8x1xf32>
    %cst_5 = arith.constant dense<0.000000e+00> : vector<1xf32>
    %16 = vector.multi_reduction <add>, %15, %cst_5 [0] : vector<8x1xf32> to vector<1xf32>
    %17 = vector.shape_cast %16 : vector<1xf32> to vector<1x1xf32>
    %c0_i32_6 = arith.constant 0 : i32
    %18 = arith.cmpi ne, %arg1, %c0_i32_6 : i32
    %19 = arith.extui %18 : i1 to i32
    %c0_i32_7 = arith.constant 0 : i32
    %20 = arith.cmpi ne, %19, %c0_i32_7 : i32
    scf.if %20 {
      %c0_10 = arith.constant 0 : index
      %c0_11 = arith.constant 0 : index
      %27 = vector.load %arg7[%c0_10, %c0_11] : memref<16x128xf32, #tpu.memory_space<vmem>>, vector<8x128xf32>
      %28 = arith.mulf %27, %6 : vector<8x128xf32>
      %cst_12 = arith.constant dense<0.000000e+00> : vector<8xf32>
      %29 = vector.multi_reduction <add>, %28, %cst_12 [1] : vector<8x128xf32> to vector<8xf32>
      %30 = vector.shape_cast %29 : vector<8xf32> to vector<8x1xf32>
      %cst_13 = arith.constant dense<0.000000e+00> : vector<1xf32>
      %31 = vector.multi_reduction <add>, %30, %cst_13 [0] : vector<8x1xf32> to vector<1xf32>
      %32 = vector.shape_cast %31 : vector<1xf32> to vector<1x1xf32>
      %c0_14 = arith.constant 0 : index
      %c0_15 = arith.constant 0 : index
      %33 = vector.load %arg8[%c0_14, %c0_15] : memref<1x1xf32, #tpu.memory_space<vmem>>, vector<1x1xf32>
      %34 = arith.subf %17, %32 : vector<1x1xf32>
      %35 = arith.addf %33, %34 : vector<1x1xf32>
      %c0_16 = arith.constant 0 : index
      %c0_17 = arith.constant 0 : index
      %36 = vector.load %arg8[%c0_16, %c0_17] : memref<1x1xf32, #tpu.memory_space<vmem>>, vector<1x1xf32>
      tpu.vector_store %arg8[%c0_16, %c0_17], %35 {strides = array<i32>} : memref<1x1xf32, #tpu.memory_space<vmem>>, vector<1x1xf32>,
    } else {
    }
    %c1_i32 = arith.constant 1 : i32
    %21 = arith.cmpi ne, %arg1, %c1_i32 : i32
    %22 = arith.extui %21 : i1 to i32
    %c0_i32_8 = arith.constant 0 : i32
    %23 = arith.cmpi ne, %22, %c0_i32_8 : i32
    scf.if %23 {
      %c8 = arith.constant 8 : index
      %c0_10 = arith.constant 0 : index
      %27 = vector.load %arg7[%c8, %c0_10] : memref<16x128xf32, #tpu.memory_space<vmem>>, vector<8x128xf32>
      %28 = arith.mulf %27, %6 : vector<8x128xf32>
      %cst_11 = arith.constant dense<0.000000e+00> : vector<8xf32>
      %29 = vector.multi_reduction <add>, %28, %cst_11 [1] : vector<8x128xf32> to vector<8xf32>
      %30 = vector.shape_cast %29 : vector<8xf32> to vector<8x1xf32>
      %cst_12 = arith.constant dense<0.000000e+00> : vector<1xf32>
      %31 = vector.multi_reduction <add>, %30, %cst_12 [0] : vector<8x1xf32> to vector<1xf32>
      %32 = vector.shape_cast %31 : vector<1xf32> to vector<1x1xf32>
      %c0_13 = arith.constant 0 : index
      %c0_14 = arith.constant 0 : index
      %33 = vector.load %arg8[%c0_13, %c0_14] : memref<1x1xf32, #tpu.memory_space<vmem>>, vector<1x1xf32>
      %34 = arith.subf %17, %32 : vector<1x1xf32>
      %35 = arith.addf %33, %34 : vector<1x1xf32>
      %c0_15 = arith.constant 0 : index
      %c0_16 = arith.constant 0 : index
      %36 = vector.load %arg8[%c0_15, %c0_16] : memref<1x1xf32, #tpu.memory_space<vmem>>, vector<1x1xf32>
      tpu.vector_store %arg8[%c0_15, %c0_16], %35 {strides = array<i32>} : memref<1x1xf32, #tpu.memory_space<vmem>>, vector<1x1xf32>,
    } else {
    }
    %c3_i32 = arith.constant 3 : i32
    %24 = arith.cmpi eq, %arg1, %c3_i32 : i32
    %25 = arith.extui %24 : i1 to i32
    %c0_i32_9 = arith.constant 0 : i32
    %26 = arith.cmpi ne, %25, %c0_i32_9 : i32
    scf.if %26 {
      %c0_10 = arith.constant 0 : index
      %c0_11 = arith.constant 0 : index
      %27 = vector.load %arg8[%c0_10, %c0_11] : memref<1x1xf32, #tpu.memory_space<vmem>>, vector<1x1xf32>
      %cst_12 = arith.constant 0.020833334 : f32
      %28 = vector.broadcast %cst_12 : f32 to vector<1x1xf32>
      %29 = arith.mulf %27, %28 : vector<1x1xf32>
      %30 = vector.shape_cast %29 : vector<1x1xf32> to vector<1x1xf32>
      %31 = vector.broadcast %30 : vector<1x1xf32> to vector<8x128xf32>
      %c0_13 = arith.constant 0 : index
      %c0_14 = arith.constant 0 : index
      %c0_15 = arith.constant 0 : index
      %32 = vector.load %arg6[%c0_13, %c0_14, %c0_15] : memref<1x8x128xf32, #tpu.memory_space<vmem>>, vector<1x8x128xf32>
      %33 = vector.shape_cast %32 : vector<1x8x128xf32> to vector<8x128xf32>
      %34 = vector.shape_cast %31 : vector<8x128xf32> to vector<1x8x128xf32>
      tpu.vector_store %arg6[%c0_13, %c0_14, %c0_15], %34 {strides = array<i32>} : memref<1x8x128xf32, #tpu.memory_space<vmem>>, vector<1x8x128xf32>,
    } else {
    }
    return
  }
  func.func @transform_0(%arg0: i32, %arg1: i32, %arg2: memref<1xf32, #tpu.memory_space<smem>>) -> (i32, i32, i32) {
    %c0_i32 = arith.constant 0 : i32
    %c0_i32_0 = arith.constant 0 : i32
    return %arg0, %arg1, %c0_i32 : i32, i32, i32
  }
  func.func @transform_1(%arg0: i32, %arg1: i32, %arg2: memref<1xf32, #tpu.memory_space<smem>>) -> (i32, i32) {
    %c0_i32 = arith.constant 0 : i32
    %c0_i32_0 = arith.constant 0 : i32
    %c0_i32_1 = arith.constant 0 : i32
    return %c0_i32, %c0_i32_0 : i32, i32
  }
  func.func @transform_2(%arg0: i32, %arg1: i32, %arg2: memref<1xf32, #tpu.memory_space<smem>>) -> (i32, i32) {
    %c0_i32 = arith.constant 0 : i32
    %c0_i32_0 = arith.constant 0 : i32
    %c0_i32_1 = arith.constant 0 : i32
    return %c0_i32, %c0_i32_0 : i32, i32
  }
  func.func @transform_3(%arg0: i32, %arg1: i32, %arg2: memref<1xf32, #tpu.memory_space<smem>>) -> (i32, i32, i32) {
    %c0_i32 = arith.constant 0 : i32
    %c0_i32_0 = arith.constant 0 : i32
    %c0_i32_1 = arith.constant 0 : i32
    return %arg0, %c0_i32, %c0_i32_0 : i32, i32, i32
  }
}

</mosaic_0001>

<bundles_post_ra>
// kernel: tpu_custom_call.1
= control target key start
LH: loop header
LB: loop body
LE: loop exit
PB: predicated region body
PF: predicated region fallthrough
CT: control target
= control target key end

     0   :  { %s1032_s0 = inlined_call_operand.<no memory space> [shape: f32[1], index: 0, kind: input, shape index: {}]   ;;  %s1033_s1 = inlined_call_operand.hbm [shape: f32[4,32,128], index: 1, kind: input, shape index: {}]   ;;  %s1034_s2 = inlined_call_operand.hbm [shape: f32[16,128], index: 2, kind: input, shape index: {}]   ;;  %s1035_s3 = inlined_call_operand.vmem [shape: f32[1,128], index: 3, kind: input, shape index: {}]   ;;  %s1036_s4 = inlined_call_operand.hbm [shape: f32[4,8,128], index: 4, kind: output, shape index: {}]  }
   0x1   :  { %1044 = sst [smem:[#allocation20_spill]] %s1034_s2 }
   0x2   :  { %1045 = sst [smem:[#allocation21_spill]] %s1035_s3 }
   0x3   :  { %1046 = sst [smem:[#allocation22_spill]] %s1036_s4 }
   0x4   :  { %9 = sst [smem:[#allocation5]] %s1032_s0 }
   0x5   :  { %10 = vsyncpa [#allocation7], 0 }
   0x6   :  { %12 = vsyncpa [#allocation7 + $0x1], 0 }
   0x7   :  { %13 = vsyncpa [#allocation10], 0 }
   0x8   :  { %14 = vsyncpa [#allocation8], 0 }
   0x9   :  { %16 = vsyncpa [#allocation8 + $0x1], 0  ;;  %s808_s17 = smov 0   ;;  %s810_s18 = smov 0  }
   0xa   :  { %s812_s19 = smov 0   ;;  %s814_s20 = smov 0  }
   0xb   :  { %s816_s21 = smov 0   ;;  %s818_s22 = smov 0  }
   0xc   :  { %s820_s23 = smov 0   ;;  %s822_s0 = smov 0  }
   0xd   :  { %s824_s24 = smov 0   ;;  %s826_s25 = smov 0  }
   0xe   :  { %s828_s26 = smov 0  }
   0xf LB: > { %1047 = sst [smem:[#allocation15_spill]] %s731_s17  ;;  %s440_s27 = sadd.s32 4294967295, %s771_s26   ;;  %s771_s26 = sphi %s828_s26, %s22_s26   ;;  %s767_s25 = sphi %s826_s25, %s1079_s25   ;;  %s763_s24 = sphi %s824_s24, %s1078_s24   ;;  %s759_s0 = sphi %s822_s0, %s1077_s0   ;;  %s755_s23 = sphi %s820_s23, %s1076_s23   ;;  %s751_s22 = sphi %s818_s22, %s1075_s22   ;;  %s747_s21 = sphi %s816_s21, %s1074_s21   ;;  %s743_s20 = sphi %s814_s20, %s1073_s20   ;;  %s739_s19 = sphi %s812_s19, %s1072_s19   ;;  %s735_s18 = sphi %s810_s18, %s1071_s18   ;;  %s731_s17 = sphi %s808_s17, %s1070_s17  }
  0x10   : > { %1048 = sst [smem:[#allocation16_spill]] %s759_s0  ;;  %s441_s28 = sadd.s32 4294967294, %s771_s26  }
  0x11   : > { %p56_p0 = scmp.ne.s32.totalorder %s747_s21, %s743_s20  ;;  %p864_p1 = scmp.eq.s32.totalorder %s440_s27, 0 }
  0x12   : > { %p121_p2 = scmp.ne.s32.totalorder %s739_s19, %s735_s18  ;;  %p122_p3 = scmp.eq.s32.totalorder %s440_s27, 15 }
  0x13   : > { %p872_p4 = por %p864_p1, %p56_p0  ;;  %p127_p5 = scmp.ne.s32.totalorder %s735_s18, %s731_s17 }
  0x14   : > { %p878_p6 = por %p122_p3, %p121_p2  ;;  %p128_p7 = scmp.eq.s32.totalorder %s441_s28, 15 }
  0x15   : > { %p442_p8 = scmp.ge.s32.totalorder %s771_s26, 1  ;;  %p135_p9 = scmp.lt.s32.totalorder %s771_s26, 17 }
  0x16   : > { %s1051_s5 = scalar_select %p878_p6, 1, 0 }
  0x17   : > { %p884_p10 = por %p128_p7, %p127_p5  ;;  %p888_p11 = pnand %p442_p8, %p135_p9 }
  0x18   : > { %1052 = sst [smem:[#allocation17_spill]] %s1051_s5  ;;  %s773_s8 = smov [#allocation9]  }
  0x19   : > { %s1053_s6 = scalar_select %p884_p10, 1, 0 }
  0x1a   : > { %s147_s9 = sshll.u32 %s773_s8, 4  ;;  %p469_p12 = pneg %p888_p11  ;;  %s148_s9 = int_to_ptr.vmem [resolvable:$true] %s147_s9 }
  0x1b   : > { %1054 = sst [smem:[#allocation18_spill]] %s1053_s6  ;;  %s604_s10 = scalar_lea.vmem %s148_s9, 256 }
  0x1c   : > { %p470_p13 = pnand %p469_p12, %p864_p1  ;;  %p605_p2 = scmp.ne.s32.totalorder %s148_s9, %s604_s10 }
  0x1d   : > { %p612_p7 = scmp.lt.s32.totalorder %s148_s9, %s148_s9  ;;  %p613_p6 = scmp.lt.s32.totalorder %s604_s10, %s604_s10 }
  0x1e   : > { %p595_p0 = pneg %p470_p13 }
  0x1f   : > { %p614_p10 = por %p613_p6, %p612_p7 }
  0x20   : > { %p607_p3 = pnand %p605_p2, %p595_p0 }
  0x22   : > { %p608_p5 = pneg %p607_p3 }
  0x24   : > { %p615_p8 = pnand %p614_p10, %p608_p5 }
  0x26   : > { %618 = shalt.err (!%p615_p8)
}
  0x27   : > { %s774_s11 = smov 128   ;;  %s775_s12 = smov 8  }
  0x28   : > { %s1056_s2 = sld [smem:[#allocation20_spill]]  ;;  %s31_s15 = sadd.s32 1, %s763_s24 }
  0x29   : > { %s34_s16 = sadd.s32 1, %s767_s25  ;;  %p32_p6 = scmp.ge.s32.totalorder %s31_s15, 4 }
  0x2a   : > { %s43_s20 = sadd.s32 1, %s751_s22  ;;  %p50_p9 = scmp.ne.s32.totalorder %s751_s22, %s747_s21 }
  0x2b   : > { %p51_p10 = scmp.eq.s32.totalorder %s771_s26, 0  ;;  %s1081_s15 = smov (%p32_p6, %s31_s15), 0 }
  0x2c   : > { %1057 = sst [smem:[#allocation19_spill]] %s1081_s15  ;;  %s1083_s16 = smov (!%p32_p6, %s34_s16), %s767_s25 }
  0x2d   : > { %s39_s27 = ssub.s32 %s763_s24, %s1081_s15  ;;  %p910_p12 = por %p51_p10, %p50_p9 }
  0x2e   : > { %472 = dma.hbm_to_vmem [thread:$0]  (!%p470_p13), %s1056_s2, 256, %s148_s9, [#allocation10], %s774_s11, %s774_s11, %s775_s12  }
  0x2f   : > { %p36_p13 = scmp.ge.s32.totalorder %s1083_s16, 4  ;;  %s111_s8 = sadd.s32 1, %s739_s19 }
  0x30   : > { %p482_p0 = scmp.lt.s32.totalorder %s771_s26, 16  ;;  %s164_s9 = sand.u32 1, %s751_s22  }
  0x31   : > { %s1085_s16 = smov (%p36_p13, %s1083_s16), 0  ;;  %s445_s10 = sshll.u32 %s164_s9, 3 }
  0x32   : > { %s38_s11 = ssub.s32 %s767_s25, %s1085_s16  ;;  %s446_s13 = sshll.u32 %s767_s25, 2 }
  0x33   : > { %s40_s12 = sor.u32 %s39_s27, %s38_s11  ;;  %p109_p2 = scmp.eq.s32.totalorder %s38_s11, 0 }
  0x34   : > { %p41_p3 = scmp.eq.s32.totalorder %s40_s12, 0  ;;  %s173_s15 = sadd.s32 %s763_s24, %s446_s13 }
  0x35   : > { %s923_s14 = scalar_select %p109_p2, %s739_s19, %s111_s8  }
  0x36   : > { %s926_s2 = scalar_select %p41_p3, %s751_s22, %s43_s20  }
  0x37   : > { %s168_s6 = scalar_lea.vmem [#allocation6], %s445_s10  ;;  %s447_s4 = sshll.u32 %s173_s15, 7 }
  0x38   : > { %s177_s17 = sshll.u32 %s168_s6, 4  ;;  %s175_s3 = scalar_lea.hbm %s1033_s1, %s447_s4  ;;  %s178_s17 = int_to_ptr.vmem [resolvable:$true] %s177_s17 }
  0x39   : > { %p936_p5 = pnand %p482_p0, %p910_p12  ;;  %s165_s8 = scalar_lea.sflag [#allocation7], %s164_s9 }
  0x3a   : > { %s632_s20 = scalar_lea.vmem %s178_s17, 128  ;;  %s776_s6 = smov [#allocation6]  }
  0x3b   : > { %p621_p7 = pneg %p936_p5  ;;  %p633_p8 = scmp.ne.s32.totalorder %s178_s17, %s632_s20 }
  0x3c   : > { %s637_s15 = sshll.u32 %s776_s6, 4  ;;  %s638_s15 = int_to_ptr.vmem [resolvable:$false] %s637_s15 }
  0x3d   : > { %p635_p6 = pnand %p633_p8, %p621_p7  ;;  %s639_s10 = scalar_lea.vmem %s638_s15, 256 }
  0x3e   : > { %p640_p10 = scmp.lt.s32.totalorder %s178_s17, %s638_s15  ;;  %p641_p13 = scmp.lt.s32.totalorder %s639_s10, %s632_s20 }
  0x3f   : > { %p636_p9 = pneg %p635_p6 }
  0x40   : > { %p642_p2 = por %p641_p13, %p640_p10 }
  0x42   : > { %p643_p3 = pnand %p642_p2, %p636_p9 }
  0x44   : > { %646 = shalt.err (!%p643_p3)
}
  0x45   : > { %476 = dma.hbm_to_vmem [thread:$0]  (!%p936_p5), %s175_s3, 128, %s178_s17, %s165_s8  }
  0x46   : > { %186 = sbr.rel (%p888_p11) target bundleno = 1233 (0x4d1), region = 32  ;;  %s188_s4 = sand.u32 (!%p888_p11), 1, %s747_s21  }
  0x47   : > { %s947_s0 = sshll.u32 (!%p888_p11), %s188_s4, 3  ;;  %s189_s5 = scalar_lea.sflag (!%p888_p11), [#allocation7], %s188_s4 }
  0x48   : > { %s192_s28 = scalar_lea.vmem (!%p888_p11), [#allocation6], %s947_s0 }
  0x4b   : > { %718 = dma.done.wait (%p872_p4), %s189_s5, 128  }
  0x4c   : > { %720 = vsyncadd (%p872_p4), %s189_s5, 4294967168 }
  0x4d   : > { %722 = dma.done.wait (%p864_p1), [#allocation10], 256  }
  0x4e   : > { %724 = vsyncadd (%p864_p1), [#allocation10], 4294967040  ;;  %s216_s3 = sand.u32 1, %s735_s18   ;;  %p452_p11 = scmp.ne.s32.totalorder %s755_s23, 0 }
  0x4f   : > { %s961_s17 = sshll.u32 %s216_s3, 3  ;;  %s225_s9 = sld [smem:[#allocation5]] (!%p452_p11) }
  0x50   : > { %s218_s7 = scalar_lea.vmem [#allocation11], %s961_s17  ;;  %222 = sbr.rel (%p452_p11) target bundleno = 417 (0x1a1), region = 44 }
  0x51   : > { %s1060_s12 = sld [smem:[#allocation21_spill]] (!%p452_p11) }
  0x55   : > { %v237_v0 = vstv %s225_s9  ;;  %v226_v1 = vld [vmem:[#allocation9] sm:$0xff]  ;;  %v227_v3 = vld [vmem:[#allocation9 + $0x8] sm:$0xff]  ;;  %vm223_vm0 = vcmask 0   ;;  %v777_v17 = vmov 0.0  }
  0x56   : > { %578 = vrcp.f32 %v237_v0  ;;  %224 = vst.msk [vmem:[#allocation3] sm:$0x1] %vm223_vm0, %v777_v17 }
  0x57   : > { %v453_v2 = vld [vmem:[%s1060_s12] ss:$0 sm:$0xff] }
  0x58   : > { %v235_v4 = vsub.f32 %v226_v1, %v453_v2  ;;  %v236_v5 = vsub.f32 %v227_v3, %v453_v2 }
  0x63   : > { %v579_v6 = vpop.eup %578 }
  0x64   : > { %v239_v7 = vmul.f32 %v579_v6, %v235_v4  ;;  %v240_v8 = vmul.f32 %v579_v6, %v236_v5 }
  0x66   : > { %241 = vmax.xlane.f32.xlu0 %v239_v7 }
  0x6a   : > { %243 = vmax.xlane.f32.xlu0 %v240_v8 }
  0xef   : > { %v242_v9 = vpop.xlane.xlu0 %241 }
  0xf0   : > { %v245_v10 = vsub.f32 %v239_v7, %v242_v9 }
  0xf2   : > { %v247_v11 = vmul.f32 1.442695, %v245_v10 }
  0xf3   : > { %v244_v12 = vpop.xlane.xlu0 %243 }
  0xf4   : > { %580 = vpow2.f32 %v247_v11  ;;  %v246_v13 = vsub.f32 %v240_v8, %v244_v12 }
  0xf6   : > { %v249_v14 = vmul.f32 1.442695, %v246_v13 }
  0xf8   : > { %582 = vpow2.f32 %v249_v14 }
 0x101   : > { %v581_v15 = vpop.eup %580 }
 0x102   : > { %251 = vadd.xlane.f32.xlu1 %v581_v15 }
 0x105   : > { %v583_v16 = vpop.eup %582 }
 0x106   : > { %253 = vadd.xlane.f32.xlu1 %v583_v16 }
 0x18b   : > { %v252_v18 = vpop.xlane.xlu1 %251 }
 0x18c   : > { %584 = vrcp.f32 %v252_v18 }
 0x18f   : > { %v254_v19 = vpop.xlane.xlu1 %253 }
 0x190   : > { %586 = vrcp.f32 %v254_v19 }
 0x199   : > { %v585_v20 = vpop.eup %584 }
 0x19a   : > { %v256_v21 = vmul.f32 %v585_v20, %v581_v15 }
 0x19c   : > { %259 = vst [vmem:[#allocation2] sm:$0xff] %v256_v21 }
 0x19d   : > { %v587_v22 = vpop.eup %586 }
 0x19e   : > { %v258_v23 = vmul.f32 %v587_v22, %v583_v16 }
 0x1a0   : > { %260 = vst [vmem:[#allocation2 + $0x8] sm:$0xff] %v258_v23 }
 0x1a1 PF: > { %v261_v24 = vld [vmem:[%s192_s28] sm:$0xff]  ;;  %p454_p1 = scmp.eq.s32.totalorder %s755_s23, 0 }
 0x1a2   : > { %v262_v25 = vmul.f32 10.0, %v261_v24 }
 0x1a4   : > { %263 = vmax.xlane.f32.xlu0 %v262_v25 }
 0x22d   : > { %v264_v26 = vpop.xlane.xlu0 %263 }
 0x22e   : > { %v265_v27 = vsub.f32 %v262_v25, %v264_v26 }
 0x230   : > { %v266_v28 = vmul.f32 1.442695, %v265_v27 }
 0x232   : > { %588 = vpow2.f32 %v266_v28 }
 0x23f   : > { %v589_v29 = vpop.eup %588 }
 0x240   : > { %268 = vadd.xlane.f32.xlu0 %v589_v29 }
 0x2c9   : > { %v269_v30 = vpop.xlane.xlu0 %268 }
 0x2ca   : > { %590 = vlog2.f32 %v269_v30 }
 0x2d7   : > { %v591_v31 = vpop.eup %590 }
 0x2d8   : > { %v271_v32 = vmul.f32 0.6931472, %v591_v31 }
 0x2da   : > { %v272_v33 = vadd.f32 %v271_v32, %v264_v26 }
 0x2dc   : > { %v273_v34 = vrot.slane %v272_v33, 4 }
 0x2de   : > { %v274_v35 = vadd.f32 %v273_v34, %v272_v33 }
 0x2e0   : > { %v275_v36 = vrot.slane %v274_v35, 2 }
 0x2e2   : > { %v276_v37 = vadd.f32 %v275_v36, %v274_v35  ;;  %282 = sbr.rel (%p454_p1) target bundleno = 901 (0x385), region = 48 }
 0x2e4   : > { %v277_v38 = vrot.slane %v276_v37, 1 }
 0x2e6   : > { %v278_v39 = vadd.f32 %v277_v38, %v276_v37 }
 0x2e7   : > { %v283_v40 = vld [vmem:[#allocation2] sm:$0xff]  ;;  %v293_v49 = vld [vmem:[#allocation3] sm:$0x1]  ;;  %vm296_vm1 = vcmask 0  }
 0x2e8   : > { %v284_v41 = vmul.f32 %v283_v40, %v262_v25 }
 0x2ea   : > { %285 = vadd.xlane.f32.xlu0 %v284_v41 }
 0x373   : > { %v286_v42 = vpop.xlane.xlu0 %285 }
 0x374   : > { %v287_v43 = vrot.slane %v286_v42, 4 }
 0x376   : > { %v288_v44 = vadd.f32 %v287_v43, %v286_v42 }
 0x378   : > { %v289_v45 = vrot.slane %v288_v44, 2 }
 0x37a   : > { %v290_v46 = vadd.f32 %v289_v45, %v288_v44 }
 0x37c   : > { %v291_v47 = vrot.slane %v290_v46, 1 }
 0x37e   : > { %v292_v48 = vadd.f32 %v291_v47, %v290_v46 }
 0x380   : > { %v294_v50 = vsub.f32 %v278_v39, %v292_v48 }
 0x382   : > { %v295_v51 = vadd.f32 %v294_v50, %v293_v49 }
 0x384   : > { %297 = vst.msk [vmem:[#allocation3] sm:$0x1] %vm296_vm1, %v295_v51 }
 0x385 PF: > { %p455_p4 = scmp.eq.s32.totalorder %s755_s23, 1 }
 0x387   : > { %301 = sbr.rel (%p455_p4) target bundleno = 1066 (0x42a), region = 52 }
 0x38c   : > { %v302_v52 = vld [vmem:[#allocation2 + $0x8] sm:$0xff]  ;;  %v312_v61 = vld [vmem:[#allocation3] sm:$0x1]  ;;  %vm315_vm2 = vcmask 0  }
 0x38d   : > { %v303_v53 = vmul.f32 %v302_v52, %v262_v25 }
 0x38f   : > { %304 = vadd.xlane.f32.xlu0 %v303_v53 }
 0x418   : > { %v305_v54 = vpop.xlane.xlu0 %304 }
 0x419   : > { %v306_v55 = vrot.slane %v305_v54, 4 }
 0x41b   : > { %v307_v56 = vadd.f32 %v306_v55, %v305_v54 }
 0x41d   : > { %v308_v57 = vrot.slane %v307_v56, 2 }
 0x41f   : > { %v309_v58 = vadd.f32 %v308_v57, %v307_v56 }
 0x421   : > { %v310_v59 = vrot.slane %v309_v58, 1 }
 0x423   : > { %v311_v60 = vadd.f32 %v310_v59, %v309_v58 }
 0x425   : > { %v313_v62 = vsub.f32 %v278_v39, %v311_v60 }
 0x427   : > { %v314_v63 = vadd.f32 %v313_v62, %v312_v61 }
 0x429   : > { %316 = vst.msk [vmem:[#allocation3] sm:$0x1] %vm315_vm2, %v314_v63 }
 0x42a PF: > { %p456_p12 = scmp.ne.s32.totalorder %s755_s23, 3 }
 0x42c   : > { %320 = sbr.rel (%p456_p12) target bundleno = 1206 (0x4b6), region = 56 }
 0x431   : > { %v321_v0 = vld [vmem:[#allocation3] sm:$0x1]  ;;  %v324_v1 = vlaneseq  ;;  %v778_v2 = vmov 0  }
 0x432   : > { %592 = vset.pattern.permute.xlu0 %v778_v2  ;;  %v322_v3 = vmul.f32 0.020833334, %v321_v0 }
 0x433   : > { %v325_v4 = vshrl.u32 %v324_v1, 7 }
 0x435   : > { %v326_v5 = vsub.s32 0, %v325_v4 }
 0x437   : > { %v327_v6 = vrot.slane %v322_v3, %v326_v5 }
 0x439   : > { %329 = vperm.xlu0 %592, %v327_v6  }
 0x4b4   : > { %v330_v7 = vpop.permute.xlu0 %329 }
 0x4b5   : > { %332 = vst [vmem:[%s218_s7] sm:$0xff] %v330_v7 }
 0x4b6 PF: > { %s1061_s29 = sld [smem:[#allocation16_spill]]  ;;  %s347_s10 = sshll.u32 %s218_s7, 4  ;;  %s348_s10 = int_to_ptr.vmem [resolvable:$true] %s347_s10 }
 0x4b7   : > { %s1062_s13 = sld [smem:[#allocation17_spill]]  ;;  %s334_s4 = scalar_lea.sflag [#allocation8], %s216_s3 }
 0x4b8   : > { %s1063_s20 = sld [smem:[#allocation22_spill]]  ;;  %s647_s0 = scalar_lea.vmem %s348_s10, 128 }
 0x4b9   : > { %p648_p0 = scmp.ne.s32.totalorder %s348_s10, %s647_s0  ;;  %s779_s5 = smov [#allocation11]  }
 0x4ba   : > { %s651_s28 = sshll.u32 %s779_s5, 4  ;;  %s652_s28 = int_to_ptr.vmem [resolvable:$false] %s651_s28 }
 0x4bb   : > { %s653_s9 = scalar_lea.vmem %s652_s28, 256  ;;  %p654_p6 = scmp.lt.s32.totalorder %s348_s10, %s652_s28 }
 0x4bc   : > { %s458_s23 = sshll.u32 %s1061_s29, 7  ;;  %p655_p9 = scmp.lt.s32.totalorder %s653_s9, %s647_s0 }
 0x4bd   : > { %p1065_p5 = scmp.ne.s32.totalorder %s1062_s13, 0 }
 0x4be   : > { %s1064_s6 = smov %s1063_s20  ;;  %s345_s15 = scalar_lea.hbm %s1063_s20, %s458_s23 }
 0x4bf   : > { %p649_p7 = pnand %p648_p0, %p1065_p5  ;;  %p656_p10 = por %p655_p9, %p654_p6 }
 0x4c1   : > { %p650_p8 = pneg %p649_p7 }
 0x4c3   : > { %p657_p13 = pnand %p656_p10, %p650_p8 }
 0x4c5   : > { %660 = shalt.err (!%p657_p13)
}
 0x4c6   : > { %s661_s30 = scalar_lea.hbm %s345_s15, 128  ;;  %s665_s7 = scalar_lea.hbm %s1064_s6, 512 }
 0x4c7   : > { %p662_p2 = scmp.ne.s32.totalorder %s345_s15, %s661_s30  ;;  %p666_p1 = scmp.lt.s32.totalorder %s345_s15, %s1064_s6 }
 0x4c8   : > { %p667_p4 = scmp.lt.s32.totalorder %s665_s7, %s661_s30 }
 0x4c9   : > { %p663_p3 = pnand %p662_p2, %p1065_p5 }
 0x4ca   : > { %p668_p12 = por %p667_p4, %p666_p1 }
 0x4cb   : > { %p664_p11 = pneg %p663_p3 }
 0x4cd   : > { %p669_p0 = pnand %p668_p12, %p664_p11 }
 0x4cf   : > { %672 = shalt.err (!%p669_p0)
}
 0x4d0   : > { %467 = dma.vmem_to_hbm [thread:$0]  (%p1065_p5), %s348_s10, 128, %s345_s15, %s334_s4  }
 0x4d1 PF: > { %s1066_s29 = sld [smem:[#allocation15_spill]]  ;;  %p484_p7 = scmp.ge.s32.totalorder %s771_s26, 2 }
 0x4d2   : > { %s1067_s23 = sld [smem:[#allocation18_spill]] }
 0x4d7   : > { %s359_s27 = sand.u32 1, %s1066_s29  }
 0x4d8   : > { %p1068_p8 = scmp.ne.s32.totalorder %s1067_s23, 0  ;;  %s360_s8 = scalar_lea.sflag [#allocation8], %s359_s27 }
 0x4da   : > { %p478_p6 = pnand %p484_p7, %p1068_p8 }
 0x4dc   : > { %p479_p9 = pneg %p478_p6 }
 0x4de   : > { %726 = dma.done.wait (%p479_p9), %s360_s8, 128  }
 0x4df   : > { %728 = vsyncadd (%p479_p9), %s360_s8, 4294967168  ;;  %s22_s26 = sadd.s32 1, %s771_s26   ;;  %s1069_s13 = sld [smem:[#allocation19_spill]] }
 0x4e0   : > { %p19_p10 = scmp.ge.s32.totalorder %s22_s26, 18   ;;  %s1070_s17 = smov %s735_s18 }
 0x4e1   : > { %s1071_s18 = smov %s739_s19  ;;  %s1072_s19 = smov %s923_s14 }
 0x4e2   : > { %s1073_s20 = smov %s747_s21  ;;  %s1074_s21 = smov %s751_s22 }
 0x4e3   : > { %s1075_s22 = smov %s926_s2  ;;  %s1076_s23 = smov %s763_s24 }
 0x4e4   : > { %s1077_s0 = smov %s767_s25  ;;  %s1079_s25 = smov %s1085_s16 }
 0x4e5   : > { %s1078_s24 = smov %s1069_s13  ;;  %21 = sbr.rel (!%p19_p10) target bundleno = 15 (0xf), region = 97 }
 0x4ea   :  { %365 = vsyncpa [#allocation7], 1 }
 0x4eb   :  { %367 = vsyncpa [#allocation7 + $0x1], 1 }
 0x4ec   :  { %368 = vsyncpa [#allocation10], 1 }
 0x4ed   :  { %369 = vsyncpa [#allocation8], 1 }
 0x4ee   :  { %371 = vsyncpa [#allocation8 + $0x1], 1 }

</bundles_post_ra>
